<compile_context>
chip_gen: v6e
topology: v6e:2x2x1
jax: 0.10.0
libtpu: 0.0.40
codegen_flags: <defaults>
</compile_context>

<pallas_src>
import math
from functools import partial

import jax
import jax.numpy as jnp
from jax.experimental import pallas as pl
from jax.experimental.pallas import tpu as pltpu

_EPS = 1e-5
_VMEM_LIMIT = 48 * 1024 * 1024      # headroom below v7x's 64 MiB VMEM


def _layer_norm(x, g, b):
    mu = jnp.mean(x, axis=-1, keepdims=True)
    var = jnp.mean(jnp.square(x - mu), axis=-1, keepdims=True)
    return (x - mu) * jax.lax.rsqrt(var + _EPS) * g + b


# ----------------------- kernel 1: LN1 + fused QKV --------------------------
def _ln_qkv_kernel(x_ref, g1_ref, be1_ref, wqkv_ref, bqkv_ref,
                   q_ref, k_ref, v_ref,
                   *, num_head, head_dim, embed_dim):
    xn = _layer_norm(x_ref[...], g1_ref[...], be1_ref[...]).astype(wqkv_ref.dtype)
    # One full-width MXU matmul for all of Q, K, V (f32 accumulation).
    qkv = jnp.dot(xn, wqkv_ref[...], preferred_element_type=jnp.float32)
    qkv = qkv + bqkv_ref[...]                      # [tq, 3*D], q part pre-scaled
    D, dh = embed_dim, head_dim
    # Static per-head lane slices; stores land in lane-dense [tq, dh] refs.
    for h in range(num_head):
        q_ref[h] = qkv[:, h * dh:(h + 1) * dh].astype(q_ref.dtype)
        k_ref[h] = qkv[:, D + h * dh:D + (h + 1) * dh].astype(k_ref.dtype)
        v_ref[h] = qkv[:, 2 * D + h * dh:2 * D + (h + 1) * dh].astype(v_ref.dtype)


# --------- kernel 2: flash attention + out-projection + residual ------------
def _attn_kernel(x_ref, q_ref, k_ref, v_ref, wo_ref, bo_ref, out_ref,
                 m_s, l_s, o_s, y_s, *, compute_dtype):
    h = pl.program_id(2)
    kv = pl.program_id(3)
    last_h = pl.num_programs(2) - 1
    last_kv = pl.num_programs(3) - 1

    @pl.when(jnp.logical_and(h == 0, kv == 0))
    def _():  # init out-projection accumulator for this (batch, q-tile)
        y_s[...] = jnp.zeros(y_s.shape, y_s.dtype)

    @pl.when(kv == 0)
    def _():  # init online-softmax state for this head
        m_s[...] = jnp.full(m_s.shape, -jnp.inf, m_s.dtype)
        l_s[...] = jnp.zeros(l_s.shape, l_s.dtype)
        o_s[...] = jnp.zeros(o_s.shape, o_s.dtype)

    q = q_ref[0, 0]                                   # [tq, dh] (bf16, pre-scaled)
    k = k_ref[0, 0]                                   # [tkv, dh]
    s = jax.lax.dot_general(q, k, (((1,), (1,)), ((), ())),
                            preferred_element_type=jnp.float32)   # [tq, tkv]
    m_prev = m_s[...]
    m_new = jnp.maximum(m_prev, jnp.max(s, axis=-1, keepdims=True))
    alpha = jnp.exp(m_prev - m_new)
    p = jnp.exp(s - m_new)
    l_s[...] = alpha * l_s[...] + jnp.sum(p, axis=-1, keepdims=True)
    o_s[...] = alpha * o_s[...] + jnp.dot(p.astype(compute_dtype), v_ref[0, 0],
                                          preferred_element_type=jnp.float32)
    m_s[...] = m_new

    @pl.when(kv == last_kv)          # fold the finished head into the out-proj acc
    def _():
        o = (o_s[...] * pl.reciprocal(l_s[...], approx=True)).astype(compute_dtype)
        y_s[...] += jnp.dot(o, wo_ref[0], preferred_element_type=jnp.float32)

    @pl.when(jnp.logical_and(h == last_h, kv == last_kv))
    def _():                          # residual add (dropout == identity in eval)
        out_ref[...] = (x_ref[...] + y_s[...] + bo_ref[...]).astype(out_ref.dtype)


# ------------- kernel 3: LN2 + hidden-tiled GELU MLP + residual -------------
def _ln_mlp_kernel(x_ref, g2_ref, be2_ref, w1_ref, b1_ref, w2_ref, b2_ref,
                   out_ref, xn_s, y_s, *, compute_dtype):
    j = pl.program_id(2)
    last_j = pl.num_programs(2) - 1

    @pl.when(j == 0)
    def _():
        x = x_ref[...]
        xn_s[...] = _layer_norm(x, g2_ref[...], be2_ref[...]).astype(xn_s.dtype)
        y_s[...] = x + b2_ref[...]        # residual + final bias folded into init

    h1 = jnp.dot(xn_s[...], w1_ref[...], preferred_element_type=jnp.float32) + b1_ref[...]
    h1 = jax.nn.gelu(h1, approximate=False)   # exact erf == torch F.gelu default
    y_s[...] += jnp.dot(h1.astype(compute_dtype), w2_ref[...],
                        preferred_element_type=jnp.float32)

    @pl.when(j == last_j)
    def _():
        out_ref[...] = y_s[...].astype(out_ref.dtype)


# --------------------------------- wrapper ----------------------------------
def transformer_layer(x, params, num_head, *, tq=None, tkv=None, th=None,
                      compute_dtype=jnp.bfloat16):
    (g1, be1, wqkv, bqkv, wo, bo, g2, be2, w1, b1, w2, b2) = params
    B, T, D = x.shape
    H = num_head
    dh = D // H
    F = w1.shape[1]                      # 4 * D
    cd = compute_dtype

    tq = min(T, 256) if tq is None else tq
    tkv = min(T, 512) if tkv is None else tkv
    th = min(F, 512) if th is None else th
    assert T % tq == 0 and T % tkv == 0 and F % th == 0
    assert (tq == T or tq % 8 == 0) and (tkv == T or tkv % 8 == 0)
    assert th == F or th % 128 == 0
    n_q, n_kv, n_h = T // tq, T // tkv, F // th

    # ---- host-side weight relayout (pure layout, done once by XLA) ----
    scale = 1.0 / math.sqrt(dh)
    # Fold 1/sqrt(dh) into the q columns of the fused QKV weight / bias.
    col_scale = jnp.concatenate([jnp.full((D,), scale, jnp.float32),
                                 jnp.ones((2 * D,), jnp.float32)])
    wqkv_c = (wqkv * col_scale[None, :]).astype(cd)              # [D, 3*D]
    bqkv_c = (bqkv.reshape(1, 3 * D) * col_scale[None, :]).astype(jnp.float32)
    wo_r = wo.reshape(H, dh, D).astype(cd)                       # row block per head
    w1_c = w1.astype(cd)
    w2_c = w2.astype(cd)

    full = lambda a: pl.BlockSpec(a.shape, lambda *_: (0,) * a.ndim)

    # ---------------- stage 1: LN1 + QKV -> [B, H, T, dh] ----------------
    qkv_shape = jax.ShapeDtypeStruct((B, H, T, dh), cd)
    q, k, v = pl.pallas_call(
        partial(_ln_qkv_kernel, num_head=H, head_dim=dh, embed_dim=D),
        out_shape=(qkv_shape, qkv_shape, qkv_shape),
        grid=(B, n_q),
        in_specs=[pl.BlockSpec((None, tq, D), lambda b, i: (b, i, 0)),
                  full(g1), full(be1),
                  full(wqkv_c), full(bqkv_c)],
        out_specs=(pl.BlockSpec((None, H, tq, dh), lambda b, i: (b, 0, i, 0)),) * 3,
        compiler_params=pltpu.CompilerParams(
            dimension_semantics=("parallel", "parallel"),
            vmem_limit_bytes=_VMEM_LIMIT),
    )(x, g1, be1, wqkv_c, bqkv_c)

    # ---------- stage 2: flash attention + out_proj + residual -----------
    x_attn = pl.pallas_call(
        partial(_attn_kernel, compute_dtype=cd),
        out_shape=jax.ShapeDtypeStruct((B, T, D), x.dtype),
        grid=(B, n_q, H, n_kv),
        in_specs=[pl.BlockSpec((None, tq, D), lambda b, i, h, j: (b, i, 0)),
                  pl.BlockSpec((1, 1, tq, dh), lambda b, i, h, j: (b, h, i, 0)),
                  pl.BlockSpec((1, 1, tkv, dh), lambda b, i, h, j: (b, h, j, 0)),
                  pl.BlockSpec((1, 1, tkv, dh), lambda b, i, h, j: (b, h, j, 0)),
                  pl.BlockSpec((1, dh, D), lambda b, i, h, j: (h, 0, 0)),
                  pl.BlockSpec((1, D), lambda b, i, h, j: (0, 0))],
        out_specs=pl.BlockSpec((None, tq, D), lambda b, i, h, j: (b, i, 0)),
        scratch_shapes=[pltpu.VMEM((tq, 1), jnp.float32),    # m (running max)
                        pltpu.VMEM((tq, 1), jnp.float32),    # l (running denom)
                        pltpu.VMEM((tq, dh), jnp.float32),   # per-head o accumulator
                        pltpu.VMEM((tq, D), jnp.float32)],   # out-proj accumulator
        compiler_params=pltpu.CompilerParams(
            dimension_semantics=("parallel", "parallel", "arbitrary", "arbitrary"),
            vmem_limit_bytes=_VMEM_LIMIT),
    )(x, q, k, v, wo_r, bo)

    # -------------- stage 3: LN2 + MLP (hidden-tiled) + residual ----------
    out = pl.pallas_call(
        partial(_ln_mlp_kernel, compute_dtype=cd),
        out_shape=jax.ShapeDtypeStruct((B, T, D), x.dtype),
        grid=(B, n_q, n_h),
        in_specs=[pl.BlockSpec((None, tq, D), lambda b, i, j: (b, i, 0)),
                  full(g2), full(be2),
                  pl.BlockSpec((D, th), lambda b, i, j: (0, j)),
                  pl.BlockSpec((1, th), lambda b, i, j: (0, j)),
                  pl.BlockSpec((th, D), lambda b, i, j: (j, 0)),
                  full(b2)],
        out_specs=pl.BlockSpec((None, tq, D), lambda b, i, j: (b, i, 0)),
        scratch_shapes=[pltpu.VMEM((tq, D), cd),             # LN2(x) reused over j
                        pltpu.VMEM((tq, D), jnp.float32)],   # MLP accumulator
        compiler_params=pltpu.CompilerParams(
            dimension_semantics=("parallel", "parallel", "arbitrary"),
            vmem_limit_bytes=_VMEM_LIMIT),
    )(x_attn, g2, be2, w1_c, b1, w2_c, b2)
    return out


# ---------------- pure-JAX f32 reference (for correctness check) ------------
def reference(x, params, num_head):
    (g1, be1, wqkv, bqkv, wo, bo, g2, be2, w1, b1, w2, b2) = params
    B, T, D = x.shape
    dh = D // num_head

    def ln(h, g, b):
        mu = jnp.mean(h, axis=-1, keepdims=True)
        var = jnp.mean((h - mu) ** 2, axis=-1, keepdims=True)
        return (h - mu) / jnp.sqrt(var + _EPS) * g + b

    xn = ln(x, g1, be1)
    qkv = xn @ wqkv + bqkv
    q, k, v = jnp.split(qkv, 3, axis=-1)
    q = q.reshape(B, T, num_head, dh).transpose(0, 2, 1, 3)
    k = k.reshape(B, T, num_head, dh).transpose(0, 2, 1, 3)
    v = v.reshape(B, T, num_head, dh).transpose(0, 2, 1, 3)
    s = jnp.einsum("bhtd,bhsd->bhts", q, k) / math.sqrt(dh)
    p = jax.nn.softmax(s, axis=-1)
    o = jnp.einsum("bhts,bhsd->bhtd", p, v)
    o = o.transpose(0, 2, 1, 3).reshape(B, T, D)
    x = x + (o @ wo + bo)

    xn2 = ln(x, g2, be2)
    h1 = jax.nn.gelu(xn2 @ w1 + b1, approximate=False)
    x = x + (h1 @ w2 + b2)
    return x


if __name__ == "__main__":
    B, T, D, H = 2, 8, 32, 4
    key = jax.random.PRNGKey(0)
    ks = jax.random.split(key, 13)

    def rnd(k, shape, scale=0.05):
        return (scale * jax.random.normal(k, shape)).astype(jnp.float32)

    x = rnd(ks[0], (B, T, D), scale=1.0)

    g1   = 1.0 + rnd(ks[1], (1, D), 0.1)       # LayerNorm1 weight
    be1  = rnd(ks[2], (1, D), 0.1)             # LayerNorm1 bias
    wqkv = rnd(ks[3], (D, 3 * D))              # qkv_proj weight ([in, out])
    bqkv = rnd(ks[4], (1, 3 * D))
    wo   = rnd(ks[5], (D, D))                  # out_proj
    bo   = rnd(ks[6], (1, D))
    g2   = 1.0 + rnd(ks[7], (1, D), 0.1)       # LayerNorm2 weight
    be2  = rnd(ks[8], (1, D), 0.1)
    w1   = rnd(ks[9], (D, 4 * D))              # linear1
    b1   = rnd(ks[10], (1, 4 * D))
    w2   = rnd(ks[11], (4 * D, D))             # linear2
    b2   = rnd(ks[12], (1, D))

    params = (g1, be1, wqkv, bqkv, wo, bo, g2, be2, w1, b1, w2, b2)

    out = transformer_layer(x, params, H)
    jax.block_until_ready(out)

    ref = reference(x, params, H)
    assert out.shape == (B, T, D)
    err = float(jnp.max(jnp.abs(out - ref)))
    # bf16 MXU matmuls (f32 accumulation) + approx reciprocal => looser tolerance
    # than a pure-f32 implementation.
    assert err < 2e-2, err
    print("KERNEL_OK")
</pallas_src>

<mosaic_0001>
module attributes {stable_mosaic.version = 11 : i64} {
  func.func @_ln_qkv_kernel(%arg0: i32, %arg1: i32, %arg2: memref<1x8x32xf32, #tpu.memory_space<vmem>>, %arg3: memref<1x32xf32, #tpu.memory_space<vmem>>, %arg4: memref<1x32xf32, #tpu.memory_space<vmem>>, %arg5: memref<32x96xbf16, #tpu.memory_space<vmem>>, %arg6: memref<1x96xf32, #tpu.memory_space<vmem>>, %arg7: memref<1x4x8x8xbf16, #tpu.memory_space<vmem>>, %arg8: memref<1x4x8x8xbf16, #tpu.memory_space<vmem>>, %arg9: memref<1x4x8x8xbf16, #tpu.memory_space<vmem>>) attributes {dimension_semantics = [#tpu.dimension_semantics<parallel>, #tpu.dimension_semantics<parallel>], iteration_bounds = array<i64: 2, 1>, scalar_prefetch = 0 : i64, scratch_operands = 0 : i64, tpu.core_type = #tpu.core_type<tc>, window_params = [{transform_indices = @transform_0, window_bounds = array<i64: 1, 8, 32>}, {pipeline_mode = #tpu.pipeline_mode<synchronous>, transform_indices = @transform_1, window_bounds = array<i64: 1, 32>}, {pipeline_mode = #tpu.pipeline_mode<synchronous>, transform_indices = @transform_2, window_bounds = array<i64: 1, 32>}, {pipeline_mode = #tpu.pipeline_mode<synchronous>, transform_indices = @transform_3, window_bounds = array<i64: 32, 96>}, {pipeline_mode = #tpu.pipeline_mode<synchronous>, transform_indices = @transform_4, window_bounds = array<i64: 1, 96>}, {transform_indices = @transform_5, window_bounds = array<i64: 1, 4, 8, 8>}, {transform_indices = @transform_6, window_bounds = array<i64: 1, 4, 8, 8>}, {transform_indices = @transform_7, window_bounds = array<i64: 1, 4, 8, 8>}]} {
    %c0 = arith.constant 0 : index
    %c0_0 = arith.constant 0 : index
    %c0_1 = arith.constant 0 : index
    %0 = vector.load %arg2[%c0, %c0_0, %c0_1] : memref<1x8x32xf32, #tpu.memory_space<vmem>>, vector<1x8x32xf32>
    %1 = vector.shape_cast %0 : vector<1x8x32xf32> to vector<8x32xf32>
    %c0_2 = arith.constant 0 : index
    %c0_3 = arith.constant 0 : index
    %2 = vector.load %arg3[%c0_2, %c0_3] : memref<1x32xf32, #tpu.memory_space<vmem>>, vector<1x32xf32>
    %c0_4 = arith.constant 0 : index
    %c0_5 = arith.constant 0 : index
    %3 = vector.load %arg4[%c0_4, %c0_5] : memref<1x32xf32, #tpu.memory_space<vmem>>, vector<1x32xf32>
    %cst = arith.constant dense<0.000000e+00> : vector<8xf32>
    %4 = vector.multi_reduction <add>, %1, %cst [1] : vector<8x32xf32> to vector<8xf32>
    %5 = vector.shape_cast %4 : vector<8xf32> to vector<8x1xf32>
    %cst_6 = arith.constant 3.200000e+01 : f32
    %6 = vector.broadcast %cst_6 : f32 to vector<8x1xf32>
    %7 = arith.divf %5, %6 : vector<8x1xf32>
    %8 = vector.broadcast %7 : vector<8x1xf32> to vector<8x32xf32>
    %9 = arith.subf %1, %8 : vector<8x32xf32>
    %10 = arith.mulf %9, %9 : vector<8x32xf32>
    %cst_7 = arith.constant dense<0.000000e+00> : vector<8xf32>
    %11 = vector.multi_reduction <add>, %10, %cst_7 [1] : vector<8x32xf32> to vector<8xf32>
    %12 = vector.shape_cast %11 : vector<8xf32> to vector<8x1xf32>
    %cst_8 = arith.constant 3.200000e+01 : f32
    %13 = vector.broadcast %cst_8 : f32 to vector<8x1xf32>
    %14 = arith.divf %12, %13 : vector<8x1xf32>
    %15 = vector.broadcast %7 : vector<8x1xf32> to vector<8x32xf32>
    %16 = arith.subf %1, %15 : vector<8x32xf32>
    %cst_9 = arith.constant 9.99999974E-6 : f32
    %17 = vector.broadcast %cst_9 : f32 to vector<8x1xf32>
    %18 = arith.addf %14, %17 : vector<8x1xf32>
    %19 = math.rsqrt %18 : vector<8x1xf32>
    %20 = vector.broadcast %19 : vector<8x1xf32> to vector<8x32xf32>
    %21 = arith.mulf %16, %20 : vector<8x32xf32>
    %22 = vector.broadcast %2 : vector<1x32xf32> to vector<8x32xf32>
    %23 = arith.mulf %21, %22 : vector<8x32xf32>
    %24 = vector.broadcast %3 : vector<1x32xf32> to vector<8x32xf32>
    %25 = arith.addf %23, %24 : vector<8x32xf32>
    %26 = arith.truncf %25 : vector<8x32xf32> to vector<8x32xbf16>
    %c0_10 = arith.constant 0 : index
    %c0_11 = arith.constant 0 : index
    %27 = vector.load %arg5[%c0_10, %c0_11] : memref<32x96xbf16, #tpu.memory_space<vmem>>, vector<32x96xbf16>
    %cst_12 = arith.constant dense<0.000000e+00> : vector<8x96xf32>
    %28 = tpu.matmul %26, %27, %cst_12 {dimension_numbers = #tpu.dot_dimension_numbers<[1], [0], [0], [1], [0, 0, 1, 1], [], []>} : vector<8x32xbf16>, vector<32x96xbf16>, vector<8x96xf32> -> vector<8x96xf32>
    %c0_13 = arith.constant 0 : index
    %c0_14 = arith.constant 0 : index
    %29 = vector.load %arg6[%c0_13, %c0_14] : memref<1x96xf32, #tpu.memory_space<vmem>>, vector<1x96xf32>
    %30 = vector.broadcast %29 : vector<1x96xf32> to vector<8x96xf32>
    %31 = arith.addf %28, %30 : vector<8x96xf32>
    %32 = vector.extract_strided_slice %31 {offsets = [0, 0], sizes = [8, 8], strides = [1, 1]} : vector<8x96xf32> to vector<8x8xf32>
    %33 = arith.truncf %32 : vector<8x8xf32> to vector<8x8xbf16>
    %c0_15 = arith.constant 0 : index
    %c0_16 = arith.constant 0 : index
    %c0_17 = arith.constant 0 : index
    %c0_18 = arith.constant 0 : index
    %34 = vector.load %arg7[%c0_15, %c0_16, %c0_17, %c0_18] : memref<1x4x8x8xbf16, #tpu.memory_space<vmem>>, vector<1x1x8x8xbf16>
    %35 = vector.shape_cast %34 : vector<1x1x8x8xbf16> to vector<8x8xbf16>
    %36 = vector.shape_cast %33 : vector<8x8xbf16> to vector<1x1x8x8xbf16>
    tpu.vector_store %arg7[%c0_15, %c0_16, %c0_17, %c0_18], %36 {strides = array<i32>} : memref<1x4x8x8xbf16, #tpu.memory_space<vmem>>, vector<1x1x8x8xbf16>,
    %37 = vector.extract_strided_slice %31 {offsets = [0, 32], sizes = [8, 8], strides = [1, 1]} : vector<8x96xf32> to vector<8x8xf32>
    %38 = arith.truncf %37 : vector<8x8xf32> to vector<8x8xbf16>
    %c0_19 = arith.constant 0 : index
    %c0_20 = arith.constant 0 : index
    %c0_21 = arith.constant 0 : index
    %c0_22 = arith.constant 0 : index
    %39 = vector.load %arg8[%c0_19, %c0_20, %c0_21, %c0_22] : memref<1x4x8x8xbf16, #tpu.memory_space<vmem>>, vector<1x1x8x8xbf16>
    %40 = vector.shape_cast %39 : vector<1x1x8x8xbf16> to vector<8x8xbf16>
    %41 = vector.shape_cast %38 : vector<8x8xbf16> to vector<1x1x8x8xbf16>
    tpu.vector_store %arg8[%c0_19, %c0_20, %c0_21, %c0_22], %41 {strides = array<i32>} : memref<1x4x8x8xbf16, #tpu.memory_space<vmem>>, vector<1x1x8x8xbf16>,
    %42 = vector.extract_strided_slice %31 {offsets = [0, 64], sizes = [8, 8], strides = [1, 1]} : vector<8x96xf32> to vector<8x8xf32>
    %43 = arith.truncf %42 : vector<8x8xf32> to vector<8x8xbf16>
    %c0_23 = arith.constant 0 : index
    %c0_24 = arith.constant 0 : index
    %c0_25 = arith.constant 0 : index
    %c0_26 = arith.constant 0 : index
    %44 = vector.load %arg9[%c0_23, %c0_24, %c0_25, %c0_26] : memref<1x4x8x8xbf16, #tpu.memory_space<vmem>>, vector<1x1x8x8xbf16>
    %45 = vector.shape_cast %44 : vector<1x1x8x8xbf16> to vector<8x8xbf16>
    %46 = vector.shape_cast %43 : vector<8x8xbf16> to vector<1x1x8x8xbf16>
    tpu.vector_store %arg9[%c0_23, %c0_24, %c0_25, %c0_26], %46 {strides = array<i32>} : memref<1x4x8x8xbf16, #tpu.memory_space<vmem>>, vector<1x1x8x8xbf16>,
    %47 = vector.extract_strided_slice %31 {offsets = [0, 8], sizes = [8, 8], strides = [1, 1]} : vector<8x96xf32> to vector<8x8xf32>
    %48 = arith.truncf %47 : vector<8x8xf32> to vector<8x8xbf16>
    %c0_27 = arith.constant 0 : index
    %c1 = arith.constant 1 : index
    %c0_28 = arith.constant 0 : index
    %c0_29 = arith.constant 0 : index
    %49 = vector.load %arg7[%c0_27, %c1, %c0_28, %c0_29] : memref<1x4x8x8xbf16, #tpu.memory_space<vmem>>, vector<1x1x8x8xbf16>
    %50 = vector.shape_cast %49 : vector<1x1x8x8xbf16> to vector<8x8xbf16>
    %51 = vector.shape_cast %48 : vector<8x8xbf16> to vector<1x1x8x8xbf16>
    tpu.vector_store %arg7[%c0_27, %c1, %c0_28, %c0_29], %51 {strides = array<i32>} : memref<1x4x8x8xbf16, #tpu.memory_space<vmem>>, vector<1x1x8x8xbf16>,
    %52 = vector.extract_strided_slice %31 {offsets = [0, 40], sizes = [8, 8], strides = [1, 1]} : vector<8x96xf32> to vector<8x8xf32>
    %53 = arith.truncf %52 : vector<8x8xf32> to vector<8x8xbf16>
    %c0_30 = arith.constant 0 : index
    %c1_31 = arith.constant 1 : index
    %c0_32 = arith.constant 0 : index
    %c0_33 = arith.constant 0 : index
    %54 = vector.load %arg8[%c0_30, %c1_31, %c0_32, %c0_33] : memref<1x4x8x8xbf16, #tpu.memory_space<vmem>>, vector<1x1x8x8xbf16>
    %55 = vector.shape_cast %54 : vector<1x1x8x8xbf16> to vector<8x8xbf16>
    %56 = vector.shape_cast %53 : vector<8x8xbf16> to vector<1x1x8x8xbf16>
    tpu.vector_store %arg8[%c0_30, %c1_31, %c0_32, %c0_33], %56 {strides = array<i32>} : memref<1x4x8x8xbf16, #tpu.memory_space<vmem>>, vector<1x1x8x8xbf16>,
    %57 = vector.extract_strided_slice %31 {offsets = [0, 72], sizes = [8, 8], strides = [1, 1]} : vector<8x96xf32> to vector<8x8xf32>
    %58 = arith.truncf %57 : vector<8x8xf32> to vector<8x8xbf16>
    %c0_34 = arith.constant 0 : index
    %c1_35 = arith.constant 1 : index
    %c0_36 = arith.constant 0 : index
    %c0_37 = arith.constant 0 : index
    %59 = vector.load %arg9[%c0_34, %c1_35, %c0_36, %c0_37] : memref<1x4x8x8xbf16, #tpu.memory_space<vmem>>, vector<1x1x8x8xbf16>
    %60 = vector.shape_cast %59 : vector<1x1x8x8xbf16> to vector<8x8xbf16>
    %61 = vector.shape_cast %58 : vector<8x8xbf16> to vector<1x1x8x8xbf16>
    tpu.vector_store %arg9[%c0_34, %c1_35, %c0_36, %c0_37], %61 {strides = array<i32>} : memref<1x4x8x8xbf16, #tpu.memory_space<vmem>>, vector<1x1x8x8xbf16>,
    %62 = vector.extract_strided_slice %31 {offsets = [0, 16], sizes = [8, 8], strides = [1, 1]} : vector<8x96xf32> to vector<8x8xf32>
    %63 = arith.truncf %62 : vector<8x8xf32> to vector<8x8xbf16>
    %c0_38 = arith.constant 0 : index
    %c2 = arith.constant 2 : index
    %c0_39 = arith.constant 0 : index
    %c0_40 = arith.constant 0 : index
    %64 = vector.load %arg7[%c0_38, %c2, %c0_39, %c0_40] : memref<1x4x8x8xbf16, #tpu.memory_space<vmem>>, vector<1x1x8x8xbf16>
    %65 = vector.shape_cast %64 : vector<1x1x8x8xbf16> to vector<8x8xbf16>
    %66 = vector.shape_cast %63 : vector<8x8xbf16> to vector<1x1x8x8xbf16>
    tpu.vector_store %arg7[%c0_38, %c2, %c0_39, %c0_40], %66 {strides = array<i32>} : memref<1x4x8x8xbf16, #tpu.memory_space<vmem>>, vector<1x1x8x8xbf16>,
    %67 = vector.extract_strided_slice %31 {offsets = [0, 48], sizes = [8, 8], strides = [1, 1]} : vector<8x96xf32> to vector<8x8xf32>
    %68 = arith.truncf %67 : vector<8x8xf32> to vector<8x8xbf16>
    %c0_41 = arith.constant 0 : index
    %c2_42 = arith.constant 2 : index
    %c0_43 = arith.constant 0 : index
    %c0_44 = arith.constant 0 : index
    %69 = vector.load %arg8[%c0_41, %c2_42, %c0_43, %c0_44] : memref<1x4x8x8xbf16, #tpu.memory_space<vmem>>, vector<1x1x8x8xbf16>
    %70 = vector.shape_cast %69 : vector<1x1x8x8xbf16> to vector<8x8xbf16>
    %71 = vector.shape_cast %68 : vector<8x8xbf16> to vector<1x1x8x8xbf16>
    tpu.vector_store %arg8[%c0_41, %c2_42, %c0_43, %c0_44], %71 {strides = array<i32>} : memref<1x4x8x8xbf16, #tpu.memory_space<vmem>>, vector<1x1x8x8xbf16>,
    %72 = vector.extract_strided_slice %31 {offsets = [0, 80], sizes = [8, 8], strides = [1, 1]} : vector<8x96xf32> to vector<8x8xf32>
    %73 = arith.truncf %72 : vector<8x8xf32> to vector<8x8xbf16>
    %c0_45 = arith.constant 0 : index
    %c2_46 = arith.constant 2 : index
    %c0_47 = arith.constant 0 : index
    %c0_48 = arith.constant 0 : index
    %74 = vector.load %arg9[%c0_45, %c2_46, %c0_47, %c0_48] : memref<1x4x8x8xbf16, #tpu.memory_space<vmem>>, vector<1x1x8x8xbf16>
    %75 = vector.shape_cast %74 : vector<1x1x8x8xbf16> to vector<8x8xbf16>
    %76 = vector.shape_cast %73 : vector<8x8xbf16> to vector<1x1x8x8xbf16>
    tpu.vector_store %arg9[%c0_45, %c2_46, %c0_47, %c0_48], %76 {strides = array<i32>} : memref<1x4x8x8xbf16, #tpu.memory_space<vmem>>, vector<1x1x8x8xbf16>,
    %77 = vector.extract_strided_slice %31 {offsets = [0, 24], sizes = [8, 8], strides = [1, 1]} : vector<8x96xf32> to vector<8x8xf32>
    %78 = arith.truncf %77 : vector<8x8xf32> to vector<8x8xbf16>
    %c0_49 = arith.constant 0 : index
    %c3 = arith.constant 3 : index
    %c0_50 = arith.constant 0 : index
    %c0_51 = arith.constant 0 : index
    %79 = vector.load %arg7[%c0_49, %c3, %c0_50, %c0_51] : memref<1x4x8x8xbf16, #tpu.memory_space<vmem>>, vector<1x1x8x8xbf16>
    %80 = vector.shape_cast %79 : vector<1x1x8x8xbf16> to vector<8x8xbf16>
    %81 = vector.shape_cast %78 : vector<8x8xbf16> to vector<1x1x8x8xbf16>
    tpu.vector_store %arg7[%c0_49, %c3, %c0_50, %c0_51], %81 {strides = array<i32>} : memref<1x4x8x8xbf16, #tpu.memory_space<vmem>>, vector<1x1x8x8xbf16>,
    %82 = vector.extract_strided_slice %31 {offsets = [0, 56], sizes = [8, 8], strides = [1, 1]} : vector<8x96xf32> to vector<8x8xf32>
    %83 = arith.truncf %82 : vector<8x8xf32> to vector<8x8xbf16>
    %c0_52 = arith.constant 0 : index
    %c3_53 = arith.constant 3 : index
    %c0_54 = arith.constant 0 : index
    %c0_55 = arith.constant 0 : index
    %84 = vector.load %arg8[%c0_52, %c3_53, %c0_54, %c0_55] : memref<1x4x8x8xbf16, #tpu.memory_space<vmem>>, vector<1x1x8x8xbf16>
    %85 = vector.shape_cast %84 : vector<1x1x8x8xbf16> to vector<8x8xbf16>
    %86 = vector.shape_cast %83 : vector<8x8xbf16> to vector<1x1x8x8xbf16>
    tpu.vector_store %arg8[%c0_52, %c3_53, %c0_54, %c0_55], %86 {strides = array<i32>} : memref<1x4x8x8xbf16, #tpu.memory_space<vmem>>, vector<1x1x8x8xbf16>,
    %87 = vector.extract_strided_slice %31 {offsets = [0, 88], sizes = [8, 8], strides = [1, 1]} : vector<8x96xf32> to vector<8x8xf32>
    %88 = arith.truncf %87 : vector<8x8xf32> to vector<8x8xbf16>
    %c0_56 = arith.constant 0 : index
    %c3_57 = arith.constant 3 : index
    %c0_58 = arith.constant 0 : index
    %c0_59 = arith.constant 0 : index
    %89 = vector.load %arg9[%c0_56, %c3_57, %c0_58, %c0_59] : memref<1x4x8x8xbf16, #tpu.memory_space<vmem>>, vector<1x1x8x8xbf16>
    %90 = vector.shape_cast %89 : vector<1x1x8x8xbf16> to vector<8x8xbf16>
    %91 = vector.shape_cast %88 : vector<8x8xbf16> to vector<1x1x8x8xbf16>
    tpu.vector_store %arg9[%c0_56, %c3_57, %c0_58, %c0_59], %91 {strides = array<i32>} : memref<1x4x8x8xbf16, #tpu.memory_space<vmem>>, vector<1x1x8x8xbf16>,
    return
  }
  func.func @transform_0(%arg0: i32, %arg1: i32) -> (i32, i32, i32) {
    %c0_i32 = arith.constant 0 : i32
    %c0_i32_0 = arith.constant 0 : i32
    return %arg0, %arg1, %c0_i32 : i32, i32, i32
  }
  func.func @transform_1(%arg0: i32, %arg1: i32) -> (i32, i32) {
    %c0_i32 = arith.constant 0 : i32
    %c0_i32_0 = arith.constant 0 : i32
    %c0_i32_1 = arith.constant 0 : i32
    return %c0_i32, %c0_i32_0 : i32, i32
  }
  func.func @transform_2(%arg0: i32, %arg1: i32) -> (i32, i32) {
    %c0_i32 = arith.constant 0 : i32
    %c0_i32_0 = arith.constant 0 : i32
    %c0_i32_1 = arith.constant 0 : i32
    return %c0_i32, %c0_i32_0 : i32, i32
  }
  func.func @transform_3(%arg0: i32, %arg1: i32) -> (i32, i32) {
    %c0_i32 = arith.constant 0 : i32
    %c0_i32_0 = arith.constant 0 : i32
    %c0_i32_1 = arith.constant 0 : i32
    return %c0_i32, %c0_i32_0 : i32, i32
  }
  func.func @transform_4(%arg0: i32, %arg1: i32) -> (i32, i32) {
    %c0_i32 = arith.constant 0 : i32
    %c0_i32_0 = arith.constant 0 : i32
    %c0_i32_1 = arith.constant 0 : i32
    return %c0_i32, %c0_i32_0 : i32, i32
  }
  func.func @transform_5(%arg0: i32, %arg1: i32) -> (i32, i32, i32, i32) {
    %c0_i32 = arith.constant 0 : i32
    %c0_i32_0 = arith.constant 0 : i32
    %c0_i32_1 = arith.constant 0 : i32
    return %arg0, %c0_i32, %arg1, %c0_i32_0 : i32, i32, i32, i32
  }
  func.func @transform_6(%arg0: i32, %arg1: i32) -> (i32, i32, i32, i32) {
    %c0_i32 = arith.constant 0 : i32
    %c0_i32_0 = arith.constant 0 : i32
    %c0_i32_1 = arith.constant 0 : i32
    return %arg0, %c0_i32, %arg1, %c0_i32_0 : i32, i32, i32, i32
  }
  func.func @transform_7(%arg0: i32, %arg1: i32) -> (i32, i32, i32, i32) {
    %c0_i32 = arith.constant 0 : i32
    %c0_i32_0 = arith.constant 0 : i32
    %c0_i32_1 = arith.constant 0 : i32
    return %arg0, %c0_i32, %arg1, %c0_i32_0 : i32, i32, i32, i32
  }
}

</mosaic_0001>

<bundles_post_ra>
// kernel: tpu_custom_call.1
= control target key start
LH: loop header
LB: loop body
LE: loop exit
PB: predicated region body
PF: predicated region fallthrough
CT: control target
= control target key end

     0   :  { %s1437_s0 = inlined_call_operand.hbm [shape: f32[2,8,32], index: 0, kind: input, shape index: {}]   ;;  %s1438_s1 = inlined_call_operand.vmem [shape: f32[1,32], index: 1, kind: input, shape index: {}]   ;;  %s1439_s2 = inlined_call_operand.vmem [shape: f32[1,32], index: 2, kind: input, shape index: {}]   ;;  %s1440_s3 = inlined_call_operand.hbm [shape: bf16[32,96], index: 3, kind: input, shape index: {}]   ;;  %s1441_s4 = inlined_call_operand.vmem [shape: f32[1,96], index: 4, kind: input, shape index: {}]   ;;  %s1442_s5 = inlined_call_operand.hbm [shape: bf16[2,4,8,8], index: 5, kind: output, shape index: {0}]   ;;  %s1443_s6 = inlined_call_operand.hbm [shape: bf16[2,4,8,8], index: 6, kind: output, shape index: {1}]   ;;  %s1444_s7 = inlined_call_operand.hbm [shape: bf16[2,4,8,8], index: 7, kind: output, shape index: {2}]  }
   0x1   :  { %1450 = sst [smem:[#allocation18_spill]] %s1440_s3 }
   0x2   :  { %13 = vsyncpa [#allocation3], 0 }
   0x3   :  { %15 = vsyncpa [#allocation3 + $0x1], 0 }
   0x4   :  { %16 = vsyncpa [#allocation6], 0 }
   0x5   :  { %17 = vsyncpa [#allocation4], 0 }
   0x6   :  { %19 = vsyncpa [#allocation4 + $0x1], 0 }
   0x7   :  { %20 = vsyncpa [#allocation9], 0 }
   0x8   :  { %22 = vsyncpa [#allocation9 + $0x1], 0  ;;  %s1140_s24 = smov 0   ;;  %s1142_s25 = smov 0  }
   0x9   :  { %s1144_s26 = smov 0   ;;  %s1146_s27 = smov 0  }
   0xa   :  { %s1148_s28 = smov 0   ;;  %s1150_s29 = smov 0  }
   0xb LB: > { %1451 = sst [smem:[#allocation15_spill]] %s1073_s28  ;;  %s1171_s30 = sadd.s32 4294967295, %s1077_s29   ;;  %s1077_s29 = sphi %s1150_s29, %s28_s29   ;;  %s1073_s28 = sphi %s1148_s28, %s1470_s28   ;;  %s1069_s27 = sphi %s1146_s27, %s1469_s27   ;;  %s1065_s26 = sphi %s1144_s26, %s1473_s26   ;;  %s1061_s25 = sphi %s1142_s25, %s1472_s25   ;;  %s1057_s24 = sphi %s1140_s24, %s1471_s24  }
   0xc   : > { %s1445_s8 = sadd.s32 4294967294, %s1077_s29   ;;  %p62_p0 = scmp.ne.s32.totalorder %s1061_s25, %s1057_s24 }
   0xd   : > { %p1449_p1 = scmp.eq.s32.totalorder %s1171_s30, 0  ;;  %p178_p3 = scmp.eq.s32.totalorder %s1445_s8, 1 }
   0xe   : > { %p727_p5 = scmp.ge.s32.totalorder %s1077_s29, 1  ;;  %p241_p7 = scmp.lt.s32.totalorder %s1077_s29, 3 }
   0xf   : > { %p1182_p4 = por %p1449_p1, %p62_p0  ;;  %p1187_p6 = por %p178_p3, %p62_p0 }
  0x10   : > { %p1192_p8 = pnand %p727_p5, %p241_p7  ;;  %s1079_s12 = smov [#allocation5]  }
  0x11   : > { %s1453_s10 = scalar_select %p1187_p6, 1, 0 }
  0x12   : > { %s259_s13 = sshll.u32 %s1079_s12, 4  ;;  %p792_p9 = pneg %p1192_p8  ;;  %s260_s13 = int_to_ptr.vmem [resolvable:$true] %s259_s13 }
  0x13   : > { %1454 = sst [smem:[#allocation16_spill]] %s1453_s10  ;;  %s40_s15 = sadd.s32 1, %s1073_s28 }
  0x14   : > { %p1201_p11 = pnand %p792_p9, %p1449_p1  ;;  %s894_s16 = scalar_lea.vmem %s260_s13, 256 }
  0x15   : > { %p895_p13 = scmp.ne.s32.totalorder %s260_s13, %s894_s16  ;;  %p902_p5 = scmp.lt.s32.totalorder %s260_s13, %s260_s13 }
  0x16   : > { %p885_p12 = pneg %p1201_p11  ;;  %p903_p7 = scmp.lt.s32.totalorder %s894_s16, %s894_s16 }
  0x18   : > { %p897_p0 = pnand %p895_p13, %p885_p12  ;;  %p904_p2 = por %p903_p7, %p902_p5 }
  0x1a   : > { %p898_p3 = pneg %p897_p0 }
  0x1c   : > { %p905_p6 = pnand %p904_p2, %p898_p3 }
  0x1e   : > { %908 = shalt.err (!%p905_p6)
}
  0x1f   : > { %s1080_s17 = smov 64   ;;  %s1081_s18 = smov 4  }
  0x20   : > { %s1457_s3 = sld [smem:[#allocation18_spill]]  ;;  %p42_p2 = scmp.ge.s32.totalorder %s40_s15, 2 }
  0x21   : > { %s49_s21 = sadd.s32 1, %s1065_s26  ;;  %p56_p6 = scmp.ne.s32.totalorder %s1065_s26, %s1061_s25 }
  0x22   : > { %p57_p9 = scmp.eq.s32.totalorder %s1077_s29, 0  ;;  %s1475_s15 = smov (%p42_p2, %s40_s15), 0 }
  0x23   : > { %1458 = sst [smem:[#allocation17_spill]] %s1475_s15  ;;  %p1460_p13 = scmp.eq.s32.totalorder %s1171_s30, 1 }
  0x24   : > { %p1219_p12 = por %p57_p9, %p56_p6  ;;  %s44_s12 = ssub.s32 %s1073_s28, %s1475_s15 }
  0x25   : > { %p1225_p0 = por %p1460_p13, %p56_p6  ;;  %p811_p3 = scmp.lt.s32.totalorder %s1077_s29, 2 }
  0x26   : > { %795 = dma.hbm_to_vmem [thread:$0]  (!%p1201_p11), %s1457_s3, 256, %s260_s13, [#allocation6], %s1080_s17, %s1080_s17, %s1081_s18  }
  0x27   : > { %p47_p11 = scmp.eq.s32.totalorder %s44_s12, 0  ;;  %s276_s13 = sand.u32 1, %s1065_s26  }
  0x28   : > { %s730_s14 = sshll.u32 %s276_s13, 3  ;;  %s731_s17 = sshll.u32 %s1073_s28, 7 }
  0x29   : > { %s1234_s16 = scalar_select %p47_p11, %s1065_s26, %s49_s21  }
  0x2a   : > { %s286_s20 = scalar_lea.hbm %s1437_s0, %s731_s17  ;;  %s280_s8 = scalar_lea.vmem [#allocation2], %s730_s14 }
  0x2b   : > { %s288_s3 = sshll.u32 %s280_s8, 4  ;;  %p1242_p5 = pnand %p811_p3, %p1219_p12  ;;  %s289_s3 = int_to_ptr.vmem [resolvable:$true] %s288_s3 }
  0x2c   : > { %s277_s15 = scalar_lea.sflag [#allocation3], %s276_s13  ;;  %s922_s12 = scalar_lea.vmem %s289_s3, 128 }
  0x2d   : > { %p911_p7 = pneg %p1242_p5  ;;  %p923_p2 = scmp.ne.s32.totalorder %s289_s3, %s922_s12 }
  0x2e   : > { %s1082_s21 = smov [#allocation2]  }
  0x2f   : > { %p925_p6 = pnand %p923_p2, %p911_p7  ;;  %s927_s28 = sshll.u32 %s1082_s21, 4  ;;  %s928_s28 = int_to_ptr.vmem [resolvable:$false] %s927_s28 }
  0x30   : > { %s929_s17 = scalar_lea.vmem %s928_s28, 256  ;;  %p930_p13 = scmp.lt.s32.totalorder %s289_s3, %s928_s28 }
  0x31   : > { %p926_p9 = pneg %p925_p6  ;;  %p931_p11 = scmp.lt.s32.totalorder %s929_s17, %s922_s12 }
  0x33   : > { %p932_p10 = por %p931_p11, %p930_p13 }
  0x35   : > { %p933_p1 = pnand %p932_p10, %p926_p9 }
  0x37   : > { %936 = shalt.err (!%p933_p1)
}
  0x38   : > { %799 = dma.hbm_to_vmem [thread:$0]  (!%p1242_p5), %s286_s20, 128, %s289_s3, %s277_s15  }
  0x39   : > { %297 = sbr.rel (%p1192_p8) target bundleno = 757 (0x2f5), region = 40  ;;  %s1253_s8 = sand.u32 (!%p1192_p8), 1, %s1061_s25  }
  0x3a   : > { %s733_s22 = sshll.u32 (!%p1192_p8), %s1253_s8, 3  ;;  %s300_s13 = scalar_lea.sflag (!%p1192_p8), [#allocation3], %s1253_s8 }
  0x3b   : > { %s303_s14 = scalar_lea.vmem (!%p1192_p8), [#allocation2], %s733_s22 }
  0x3e   : > { %1040 = dma.done.wait (%p1182_p4), %s300_s13, 128  }
  0x3f   : > { %1042 = vsyncadd (%p1182_p4), %s300_s13, 4294967168  ;;  %p1463_p1 = scmp.eq.s32.totalorder %s1171_s30, 0 }
  0x41   : > { %1044 = dma.done.wait (%p1463_p1), [#allocation6], 256   ;;  %p1464_p10 = pmov %p1463_p1 }
  0x42   : > { %vm352_vm0 = vcmask 261120   ;;  %v349_v0 = vld [vmem:[%s303_s14] sm:$0xff]  ;;  %v879_v7 = vld [vmem:[#allocation5 + $0x8] sm:$0xff]   ;;  %v1083_v8 = vmov 0.0   ;;  %vm1084_vm1 = vmmov 0   ;;  %v880_v9 = vld [vmem:[#allocation5] sm:$0xff]  }
  0x43   : > { %1046 = vsyncadd (%p1464_p10), [#allocation6], 4294967040  ;;  %v353_v1 = vsel %vm352_vm0, %v349_v0, 0.0  ;;  %772 = vmatprep.subr.bf16.mxu0 %v1083_v8  ;;  %776 = vmatprep.mubr.msk.bf16.mxu0 %vm1084_vm1, %v1083_v8  ;;  %v738_v14 = vld [vmem:[%s1438_s1] ss:$0 sm:$0xff]  ;;  %s1278_s18 = sshll.u32 %s1253_s8, 4 }
  0x44   : > { %354 = vadd.xlane.f32.xlu0 %v353_v1  ;;  %773 = vmatpush3.bf16.msra.mxu0 %v879_v7  ;;  %v739_v16 = vld [vmem:[%s1439_s2] ss:$0 sm:$0xff]  ;;  %vm449_vm2 = vcmask 60416   ;;  %s1085_s19 = smov 80   ;;  %s1086_s20 = smov 96  }
  0x45   : > { %774 = vmatprep.subr.bf16.mxu0 %v1083_v8  ;;  %v740_v20 = vld [vmem:[%s1441_s4] ss:$0 sm:$0xff]  ;;  %s1281_s12 = scalar_lea.vmem [#allocation7], %s1278_s18  ;;  %s1087_s21 = smov 104  }
  0x46   : > { %s1088_s17 = smov 88   ;;  %s1089_s22 = smov 72  }
  0x47   : > { %s1090_s13 = smov 64   ;;  %s1091_s14 = smov 120  }
  0x48   : > { %775 = vmatpush3.bf16.msra.mxu0 %v880_v9  ;;  %s1092_s3 = smov 56   ;;  %s1093_s28 = smov 112  }
  0x49   : > { %s1094_s9 = smov 48   ;;  %s1095_s10 = smov 40  }
  0x4a   : > { %s340_s11 = scalar_lea.vmem [#allocation8], %s1278_s18 }
  0x4b   : > { %s549_s15 = sshll.u32 %s340_s11, 4  ;;  %s1296_s15 = int_to_ptr.vmem [resolvable:$true] %s549_s15 }
  0xcd   : > { %v355_v2 = vpop.xlane.xlu0 %354 }
  0xce   : > { %v357_v3 = vmul.f32 0.03125, %v355_v2 }
  0xd0   : > { %v358_v4 = vsub.f32 %v349_v0, %v357_v3 }
  0xd2   : > { %v359_v5 = vmul.f32 %v358_v4, %v358_v4 }
  0xd4   : > { %v360_v6 = vsel %vm352_vm0, %v359_v5, 0.0 }
  0xd5   : > { %361 = vadd.xlane.f32.xlu0 %v360_v6 }
 0x15e   : > { %v362_v10 = vpop.xlane.xlu0 %361 }
 0x15f   : > { %v363_v11 = vmul.f32 0.03125, %v362_v10 }
 0x161   : > { %v364_v12 = vadd.f32 1e-05, %v363_v11 }
 0x163   : > { %881 = vrsqrt.f32 %v364_v12 }
 0x170   : > { %v882_v13 = vpop.eup %881 }
 0x171   : > { %v366_v15 = vmul.f32 %v882_v13, %v358_v4 }
 0x173   : > { %v373_v17 = vmul.f32 %v738_v14, %v366_v15 }
 0x175   : > { %v380_v18 = vadd.f32 %v739_v16, %v373_v17 }
 0x177   : > { %v381_v19 = vpack.c.bf16 %v380_v18, %v380_v18 }
 0x179   : > { %777 = vmatmul.mubr.msk.bf16.vlgmr.msra.gmra.mxu0 %vm352_vm0, %v381_v19 }
 0x239   : > { %v442_v21 = vpop.f32.mrf.mxu0 }
 0x23a   : > { %v443_v22 = vadd.f32 %v740_v20, %v442_v21 }
 0x23b   : > { %v778_v23 = vpop.f32.mrf.mxu0 }
 0x23c   : > { %v448_v24 = vpack.c.bf16 %v443_v22, %v443_v22 }
 0x23d   : > { %v445_v25 = vpop.f32.mrf.mxu0 }
 0x23e   : > { %482 = vrot.lane.b32.xlu0 %v448_v24, %s1085_s19  ;;  %454 = vrot.lane.b32.xlu1 %v448_v24, %s1086_s20  ;;  %450 = vst.msk [vmem:[%s1281_s12] sm:$0xf] %vm449_vm2, %v448_v24  ;;  %s512_s19 = sand.u32 1, %s1171_s30   ;;  %s1291_s20 = sshll.u32 %s1069_s27, 8 }
 0x23f   : > { %v779_v26 = vpop.f32.mrf.mxu0  ;;  %s1305_s27 = scalar_lea.sflag [#allocation9], %s512_s19  ;;  %s937_s30 = scalar_lea.vmem %s1296_s15, 256 }
 0x240   : > { %p938_p4 = scmp.ne.s32.totalorder %s1296_s15, %s937_s30 }
 0x242   : > { %492 = vrot.lane.b32.xlu0 %v448_v24, %s1087_s21  ;;  %467 = vrot.lane.b32.xlu1 %v448_v24, %s1088_s17  ;;  %p939_p8 = pnand %p938_p4, %p1225_p0 }
 0x244   : > { %p940_p12 = pneg %p939_p8 }
 0x246   : > { %497 = vrot.lane.b32.xlu1 %v448_v24, %s1089_s22  ;;  %s1302_s22 = scalar_lea.hbm %s1443_s6, %s1291_s20 }
 0x24a   : > { %458 = vrot.lane.b32.xlu1 %v448_v24, %s1090_s13 }
 0x24e   : > { %462 = vrot.lane.b32.xlu1 %v448_v24, %s1091_s14  ;;  %s1096_s14 = smov [#allocation8]  }
 0x252   : > { %472 = vrot.lane.b32.xlu1 %v448_v24, %s1092_s3  ;;  %s941_s3 = sshll.u32 %s1096_s14, 4  ;;  %s942_s3 = int_to_ptr.vmem [resolvable:$false] %s941_s3 }
 0x253   : > { %p944_p3 = scmp.lt.s32.totalorder %s1296_s15, %s942_s3 }
 0x256   : > { %477 = vrot.lane.b32.xlu1 %v448_v24, %s1093_s28  ;;  %s943_s28 = scalar_lea.vmem %s942_s3, 512 }
 0x257   : > { %p945_p5 = scmp.lt.s32.totalorder %s943_s28, %s937_s30 }
 0x259   : > { %p946_p7 = por %p945_p5, %p944_p3 }
 0x25a   : > { %487 = vrot.lane.b32.xlu1 %v448_v24, %s1094_s9 }
 0x25b   : > { %p947_p2 = pnand %p946_p7, %p940_p12 }
 0x25e   : > { %502 = vrot.lane.b32.xlu1 %v448_v24, %s1095_s10 }
 0x2b0   : > { %v483_v27 = vpop.permute.xlu0 %482  ;;  %v455_v28 = vpop.permute.xlu1 %454 }
 0x2b1   : > { %749 = vst.msk [vmem:[%s340_s11 + $0x8] sm:$0xf] %vm449_vm2, %v483_v27  ;;  %457 = vst.msk [vmem:[%s340_s11] sm:$0xf] %vm449_vm2, %v455_v28 }
 0x2b4   : > { %v493_v29 = vpop.permute.xlu0 %492  ;;  %v468_v30 = vpop.permute.xlu1 %467 }
 0x2b5   : > { %751 = vst.msk [vmem:[%s1281_s12 + $0xc] sm:$0xf] %vm449_vm2, %v493_v29  ;;  %746 = vst.msk [vmem:[%s340_s11 + $0x4] sm:$0xf] %vm449_vm2, %v468_v30 }
 0x2b8   : > { %v498_v31 = vpop.permute.xlu1 %497 }
 0x2b9   : > { %752 = vst.msk [vmem:[%s340_s11 + $0xc] sm:$0xf] %vm449_vm2, %v498_v31 }
 0x2ba   : > { %950 = shalt.err (!%p947_p2)
}
 0x2bb   : > { %s951_s9 = scalar_lea.hbm %s1302_s22, 256  ;;  %s955_s19 = scalar_lea.hbm %s1443_s6, 512 }
 0x2bc   : > { %p952_p6 = scmp.ne.s32.totalorder %s1302_s22, %s951_s9  ;;  %p956_p11 = scmp.lt.s32.totalorder %s1302_s22, %s1443_s6 }
 0x2bd   : > { %p957_p1 = scmp.lt.s32.totalorder %s955_s19, %s951_s9 }
 0x2be   : > { %p953_p9 = pnand %p952_p6, %p1225_p0 }
 0x2bf   : > { %p958_p10 = por %p957_p1, %p956_p11 }
 0x2c0   : > { %p954_p13 = pneg %p953_p9 }
 0x2c2   : > { %p959_p4 = pnand %p958_p10, %p954_p13 }
 0x2c4   : > { %962 = shalt.err (!%p959_p4)
}
 0x2c5   : > { %s1097_s30 = smov 4   ;;  %v459_v32 = vpop.permute.xlu1 %458  ;;  %s1332_s14 = scalar_lea.vmem [#allocation10], %s1278_s18 }
 0x2c6   : > { %787 = dma.vmem_to_hbm [thread:$0]  (%p1225_p0), %s1296_s15, 256, %s1302_s22, %s1305_s27, %s1090_s13, %s1090_s13, %s1097_s30  }
 0x2c7   : > { %461 = vst.msk [vmem:[%s1332_s14] sm:$0xf] %vm449_vm2, %v459_v32  ;;  %s532_s3 = sshll.u32 %s1281_s12, 4  ;;  %s1347_s18 = scalar_lea.hbm %s1442_s5, %s1291_s20  ;;  %s1341_s3 = int_to_ptr.vmem [resolvable:$true] %s532_s3 }
 0x2c8   : > { %s508_s15 = scalar_lea.sflag [#allocation4], %s1253_s8  ;;  %s963_s22 = scalar_lea.vmem %s1341_s3, 256 }
 0x2c9   : > { %v463_v33 = vpop.permute.xlu1 %462  ;;  %p964_p8 = scmp.ne.s32.totalorder %s1341_s3, %s963_s22  ;;  %s1098_s10 = smov [#allocation7]  }
 0x2ca   : > { %745 = vst.msk [vmem:[%s1281_s12 + $0x4] sm:$0xf] %vm449_vm2, %v463_v33  ;;  %s967_s11 = sshll.u32 %s1098_s10, 4  ;;  %s968_s11 = int_to_ptr.vmem [resolvable:$false] %s967_s11 }
 0x2cb   : > { %p965_p12 = pnand %p964_p8, %p1225_p0  ;;  %s969_s19 = scalar_lea.vmem %s968_s11, 512 }
 0x2cc   : > { %p970_p5 = scmp.lt.s32.totalorder %s1341_s3, %s968_s11  ;;  %p971_p7 = scmp.lt.s32.totalorder %s969_s19, %s963_s22 }
 0x2cd   : > { %v473_v34 = vpop.permute.xlu1 %472  ;;  %p966_p3 = pneg %p965_p12 }
 0x2ce   : > { %747 = vst.msk [vmem:[%s1332_s14 + $0x4] sm:$0xf] %vm449_vm2, %v473_v34  ;;  %p972_p2 = por %p971_p7, %p970_p5 }
 0x2d0   : > { %p973_p6 = pnand %p972_p2, %p966_p3 }
 0x2d1   : > { %v478_v35 = vpop.permute.xlu1 %477 }
 0x2d2   : > { %748 = vst.msk [vmem:[%s1281_s12 + $0x8] sm:$0xf] %vm449_vm2, %v478_v35 }
 0x2d3   : > { %976 = shalt.err (!%p973_p6)
}
 0x2d4   : > { %s977_s12 = scalar_lea.hbm %s1347_s18, 256  ;;  %s981_s17 = scalar_lea.hbm %s1442_s5, 512 }
 0x2d5   : > { %p978_p9 = scmp.ne.s32.totalorder %s1347_s18, %s977_s12  ;;  %p982_p1 = scmp.lt.s32.totalorder %s1347_s18, %s1442_s5 }
 0x2d6   : > { %p983_p10 = scmp.lt.s32.totalorder %s981_s17, %s977_s12 }
 0x2d7   : > { %p979_p13 = pnand %p978_p9, %p1225_p0 }
 0x2d8   : > { %p984_p4 = por %p983_p10, %p982_p1 }
 0x2d9   : > { %p980_p11 = pneg %p979_p13 }
 0x2db   : > { %p985_p8 = pnand %p984_p4, %p980_p11 }
 0x2dd   : > { %988 = shalt.err (!%p985_p8)
}
 0x2de   : > { %786 = dma.vmem_to_hbm [thread:$0]  (%p1225_p0), %s1341_s3, 256, %s1347_s18, %s508_s15, %s1090_s13, %s1090_s13, %s1097_s30   ;;  %v488_v36 = vpop.permute.xlu1 %487 }
 0x2df   : > { %s566_s22 = sshll.u32 %s1332_s14, 4  ;;  %750 = vst.msk [vmem:[%s1332_s14 + $0x8] sm:$0xf] %vm449_vm2, %v488_v36  ;;  %s1384_s19 = scalar_lea.hbm %s1444_s7, %s1291_s20  ;;  %s1378_s22 = int_to_ptr.vmem [resolvable:$true] %s566_s22 }
 0x2e0   : > { %s989_s12 = scalar_lea.vmem %s1378_s22, 256  ;;  %s1099_s3 = smov [#allocation10]  }
 0x2e1   : > { %p990_p12 = scmp.ne.s32.totalorder %s1378_s22, %s989_s12  ;;  %s993_s18 = sshll.u32 %s1099_s3, 4  ;;  %s994_s18 = int_to_ptr.vmem [resolvable:$false] %s993_s18 }
 0x2e2   : > { %v503_v37 = vpop.permute.xlu1 %502  ;;  %s995_s15 = scalar_lea.vmem %s994_s18, 512  ;;  %p996_p7 = scmp.lt.s32.totalorder %s1378_s22, %s994_s18 }
 0x2e3   : > { %753 = vst.msk [vmem:[%s1332_s14 + $0xc] sm:$0xf] %vm449_vm2, %v503_v37  ;;  %p991_p3 = pnand %p990_p12, %p1225_p0  ;;  %p997_p2 = scmp.lt.s32.totalorder %s995_s15, %s989_s12 }
 0x2e5   : > { %p992_p5 = pneg %p991_p3  ;;  %p998_p6 = por %p997_p2, %p996_p7 }
 0x2e7   : > { %p999_p9 = pnand %p998_p6, %p992_p5 }
 0x2e9   : > { %1002 = shalt.err (!%p999_p9)
}
 0x2ea   : > { %s1003_s20 = scalar_lea.hbm %s1384_s19, 256  ;;  %s1007_s21 = scalar_lea.hbm %s1444_s7, 512 }
 0x2eb   : > { %p1004_p13 = scmp.ne.s32.totalorder %s1384_s19, %s1003_s20  ;;  %p1008_p10 = scmp.lt.s32.totalorder %s1384_s19, %s1444_s7 }
 0x2ec   : > { %p1009_p4 = scmp.lt.s32.totalorder %s1007_s21, %s1003_s20 }
 0x2ed   : > { %p1005_p11 = pnand %p1004_p13, %p1225_p0 }
 0x2ee   : > { %p1010_p8 = por %p1009_p4, %p1008_p10 }
 0x2ef   : > { %p1006_p1 = pneg %p1005_p11 }
 0x2f1   : > { %p1011_p12 = pnand %p1010_p8, %p1006_p1 }
 0x2f3   : > { %1014 = shalt.err (!%p1011_p12)
}
 0x2f4   : > { %788 = dma.vmem_to_hbm [thread:$0]  (%p1225_p0), %s1378_s22, 256, %s1384_s19, %s1305_s27, %s1090_s13, %s1090_s13, %s1097_s30  }
 0x2f5 PF: > { %s1465_s9 = sld [smem:[#allocation16_spill]]  ;;  %s581_s10 = sand.u32 1, %s1057_s24  }
 0x2f6   : > { %p1467_p5 = scmp.ge.s32.totalorder %s1077_s29, 2  ;;  %s582_s11 = scalar_lea.sflag [#allocation4], %s581_s10 }
 0x2fb   : > { %p1466_p3 = scmp.ne.s32.totalorder %s1465_s9, 0 }
 0x2fd   : > { %p801_p7 = pnand %p1467_p5, %p1466_p3 }
 0x2ff   : > { %p802_p2 = pneg %p801_p7 }
 0x301   : > { %1048 = dma.done.wait (%p802_p2), %s582_s11, 256  }
 0x302   : > { %1050 = vsyncadd (%p802_p2), %s582_s11, 4294967040  ;;  %s1468_s23 = sadd.s32 4294967294, %s1077_s29  }
 0x303   : > { %s590_s12 = sand.u32 1, %s1468_s23  }
 0x304   : > { %s591_s3 = scalar_lea.sflag [#allocation9], %s590_s12 }
 0x305   : > { %1052 = dma.done.wait (%p802_p2), %s591_s3, 512  }
 0x306   : > { %1054 = vsyncadd (%p802_p2), %s591_s3, 4294966784  ;;  %s28_s29 = sadd.s32 1, %s1077_s29   ;;  %s1469_s27 = sld [smem:[#allocation15_spill]] }
 0x307   : > { %p25_p0 = scmp.ge.s32.totalorder %s28_s29, 4   ;;  %s1470_s28 = sld [smem:[#allocation17_spill]] }
 0x308   : > { %s1471_s24 = smov %s1061_s25  ;;  %s1472_s25 = smov %s1065_s26 }
 0x309   : > { %s1473_s26 = smov %s1234_s16  ;;  %27 = sbr.rel (!%p25_p0) target bundleno = 11 (0xb), region = 130 }
 0x30e   :  { %605 = vsyncpa [#allocation3], 1 }
 0x30f   :  { %607 = vsyncpa [#allocation3 + $0x1], 1 }
 0x310   :  { %608 = vsyncpa [#allocation6], 1 }
 0x311   :  { %609 = vsyncpa [#allocation4], 1 }
 0x312   :  { %611 = vsyncpa [#allocation4 + $0x1], 1 }
 0x313   :  { %612 = vsyncpa [#allocation9], 1 }
 0x314   :  { %614 = vsyncpa [#allocation9 + $0x1], 1 }

</bundles_post_ra>
